<compile_context>
chip_gen: v5e
topology: v5e:2x2
jax: 0.10.0
libtpu: 0.0.40
codegen_flags: <defaults>
</compile_context>

<pallas_src>
import functools

import jax
import jax.numpy as jnp
from jax.experimental import pallas as pl
from jax.experimental.pallas import tpu as pltpu


def _round_up(x, m):
    return (x + m - 1) // m * m


def _decoder_kernel(x_ref, zb_ref, w1x_ref, w2_ref, b2_ref, w3_ref, b3_ref, o_ref):
    """One (batch b, target-tile n) step of the 3-layer MLP decoder.

    x_ref : (1, TILE_N, x_dim)  bf16   streamed per step
    zb_ref: (1, 1, Hp)          f32    per-batch z @ W1_z + b1 (resident per b)
    w*_ref: weights bf16 / biases f32  (VMEM-resident, constant index_map)
    o_ref : (1, TILE_N, Op)     f32    lane-dense (Op = 128-padded) output
    """
    x = x_ref[0]                                           # (TILE_N, x_dim) bf16
    zb = zb_ref[0]                                         # (1, Hp) f32

    # Layer 1: x @ W1_x  (+ per-batch z contribution, already includes b1)
    h1 = jnp.dot(x, w1x_ref[...], preferred_element_type=jnp.float32)
    h1 = jnp.maximum(h1 + zb, 0.0)                         # (TILE_N, Hp) f32

    # Layer 2
    h2 = jnp.dot(h1.astype(w2_ref.dtype), w2_ref[...],
                 preferred_element_type=jnp.float32) + b2_ref[...]
    h2 = jnp.maximum(h2, 0.0)

    # Layer 3 (lane-dense padded output)
    out = jnp.dot(h2.astype(w3_ref.dtype), w3_ref[...],
                  preferred_element_type=jnp.float32) + b3_ref[...]
    o_ref[0] = out.astype(o_ref.dtype)


def np_decoder_forward(z_sample, x_target, prep):
    """z_sample: (B, z_dim), x_target: (B, N, x_dim) -> (B, N, y_out)."""
    b, n, x_dim = x_target.shape
    hp = prep["w1x"].shape[1]          # 128-padded hidden
    op = prep["w3"].shape[1]           # 128-padded output
    y_out = prep["y_out"]

    # Tiny per-batch z contribution (B, Hp), f32, includes b1.  Done once per
    # batch row instead of once per (batch, target) row.
    zbias = jnp.dot(z_sample.astype(jnp.float32), prep["w1z"],
                    preferred_element_type=jnp.float32) + prep["b1"]
    zbias = zbias.reshape(b, 1, hp)

    # Tile the target axis.  TILE_N sized so 2x-buffered x + out tiles plus
    # resident weights stay far under the 32 MiB scoped VMEM on v7x.
    tile_n = 512 if n >= 512 else _round_up(n, 8)
    n_pad = _round_up(n, tile_n)

    x = x_target.astype(jnp.bfloat16)
    if n_pad != n:
        x = jnp.pad(x, ((0, 0), (0, n_pad - n), (0, 0)))

    grid = (b, n_pad // tile_n)

    out = pl.pallas_call(
        _decoder_kernel,
        out_shape=jax.ShapeDtypeStruct((b, n_pad, op), jnp.float32),
        grid=grid,
        in_specs=[
            # streamed per grid step
            pl.BlockSpec((1, tile_n, x_dim), lambda bi, ni: (bi, ni, 0)),
            # per-batch z bias: changes only with the batch index
            pl.BlockSpec((1, 1, hp), lambda bi, ni: (bi, 0, 0)),
            # weights / biases: constant index_map -> VMEM-resident, no re-DMA
            pl.BlockSpec((x_dim, hp), lambda bi, ni: (0, 0)),
            pl.BlockSpec((hp, hp), lambda bi, ni: (0, 0)),
            pl.BlockSpec((1, hp), lambda bi, ni: (0, 0)),
            pl.BlockSpec((hp, op), lambda bi, ni: (0, 0)),
            pl.BlockSpec((1, op), lambda bi, ni: (0, 0)),
        ],
        out_specs=pl.BlockSpec((1, tile_n, op), lambda bi, ni: (bi, ni, 0)),
        compiler_params=pltpu.CompilerParams(
            dimension_semantics=("parallel", "parallel")),
    )(x, zbias, prep["w1x"], prep["w2"], prep["b2"], prep["w3"], prep["b3"])

    return out[:, :n, :y_out]


def init_params(key, x_dim, z_dim, hidden_dim, y_out_dim):
    """Deterministic init matching nn.Linear parameter shapes (stored as (in, out))."""
    d_in = z_dim + x_dim
    keys = jax.random.split(key, 6)

    def lin(kw, kb, fan_in, fan_out):
        bound = 1.0 / jnp.sqrt(fan_in)
        w = jax.random.uniform(kw, (fan_in, fan_out), jnp.float32, -bound, bound)
        bias = jax.random.uniform(kb, (1, fan_out), jnp.float32, -bound, bound)
        return w, bias

    w1, b1 = lin(keys[0], keys[1], d_in, hidden_dim)
    w2, b2 = lin(keys[2], keys[3], hidden_dim, hidden_dim)
    w3, b3 = lin(keys[4], keys[5], hidden_dim, y_out_dim)
    return (w1, b1, w2, b2, w3, b3)


def prepare_params(params, z_dim):
    """Split W1 into z/x parts, zero-pad feature dims to 128, cast weights to bf16."""
    w1, b1, w2, b2, w3, b3 = params
    hidden = w1.shape[1]
    y_out = w3.shape[1]
    hp = _round_up(hidden, 128)
    op = _round_up(y_out, 128)

    def pad2(a, rows, cols, dtype):
        out = jnp.zeros((rows, cols), jnp.float32)
        out = out.at[: a.shape[0], : a.shape[1]].set(a)
        return out.astype(dtype)

    # Concat order in the reference module is [z, x] -> first z_dim rows of W1
    # act on z, the rest on x.
    w1_z = pad2(w1[:z_dim], z_dim, hp, jnp.float32)        # stays f32 (tiny path)
    w1_x = pad2(w1[z_dim:], w1.shape[0] - z_dim, hp, jnp.bfloat16)
    return {
        "w1z": w1_z,
        "b1": pad2(b1, 1, hp, jnp.float32),
        "w1x": w1_x,
        "w2": pad2(w2, hp, hp, jnp.bfloat16),
        "b2": pad2(b2, 1, hp, jnp.float32),
        "w3": pad2(w3, hp, op, jnp.bfloat16),
        "b3": pad2(b3, 1, op, jnp.float32),
        "y_out": y_out,
    }


def np_decoder_reference_bf16(z_sample, x_target, prep):
    """Pure-JAX reference mirroring the kernel's bf16/f32 dataflow exactly."""
    b, n, x_dim = x_target.shape
    hp = prep["w1x"].shape[1]
    y_out = prep["y_out"]
    zbias = jnp.dot(z_sample.astype(jnp.float32), prep["w1z"],
                    preferred_element_type=jnp.float32) + prep["b1"]   # (B, Hp)
    x = x_target.astype(jnp.bfloat16).reshape(b * n, x_dim)
    h1 = jnp.dot(x, prep["w1x"], preferred_element_type=jnp.float32)
    h1 = h1.reshape(b, n, hp) + zbias[:, None, :]
    h1 = jnp.maximum(h1, 0.0).reshape(b * n, hp)
    h2 = jnp.dot(h1.astype(jnp.bfloat16), prep["w2"],
                 preferred_element_type=jnp.float32) + prep["b2"]
    h2 = jnp.maximum(h2, 0.0)
    out = jnp.dot(h2.astype(jnp.bfloat16), prep["w3"],
                  preferred_element_type=jnp.float32) + prep["b3"]
    return out.reshape(b, n, -1)[:, :, :y_out]


def np_decoder_reference_f32(z_sample, x_target, params):
    """Pure-f32 reference matching the original PyTorch module semantics."""
    w1, b1, w2, b2, w3, b3 = params
    b, n, _ = x_target.shape
    z_rep = jnp.broadcast_to(z_sample[:, None, :], (b, n, z_sample.shape[-1]))
    h = jnp.concatenate([z_rep, x_target], axis=-1)
    h = jax.nn.relu(h @ w1 + b1)
    h = jax.nn.relu(h @ w2 + b2)
    return h @ w3 + b3


if __name__ == "__main__":
    # Small shapes consistent with the module: batch=2, num targets=8,
    # x_dim=4, z_dim=8, hidden=32, y_out=2.
    B, N, X_DIM, Z_DIM, HIDDEN, Y_OUT = 2, 8, 4, 8, 32, 2

    key = jax.random.PRNGKey(0)
    k_z, k_x, k_p = jax.random.split(key, 3)

    z_sample = jax.random.normal(k_z, (B, Z_DIM), jnp.float32)
    x_target = jax.random.normal(k_x, (B, N, X_DIM), jnp.float32)
    params = init_params(k_p, X_DIM, Z_DIM, HIDDEN, Y_OUT)
    prep = prepare_params(params, Z_DIM)

    fwd = jax.jit(functools.partial(np_decoder_forward, prep=prep))
    out = fwd(z_sample, x_target)
    jax.block_until_ready(out)
    assert out.shape == (B, N, Y_OUT), out.shape

    # Tight check against a reference that mirrors the kernel's bf16 dataflow.
    ref_bf16 = np_decoder_reference_bf16(z_sample, x_target, prep)
    assert jnp.allclose(out, ref_bf16, atol=1e-4, rtol=1e-4), "mismatch vs bf16 reference"

    # Loose end-to-end check against the pure-f32 module semantics
    # (difference is only bf16 weight/activation storage).
    ref_f32 = np_decoder_reference_f32(z_sample, x_target, params)
    assert jnp.allclose(out, ref_f32, atol=5e-2, rtol=5e-2), "mismatch vs f32 reference"

    print("KERNEL_OK")
</pallas_src>

<mosaic_0001>
module attributes {stable_mosaic.version = 11 : i64} {
  func.func @_decoder_kernel(%arg0: i32, %arg1: i32, %arg2: memref<1x8x4xbf16, #tpu.memory_space<vmem>>, %arg3: memref<1x1x128xf32, #tpu.memory_space<vmem>>, %arg4: memref<4x128xbf16, #tpu.memory_space<vmem>>, %arg5: memref<128x128xbf16, #tpu.memory_space<vmem>>, %arg6: memref<1x128xf32, #tpu.memory_space<vmem>>, %arg7: memref<128x128xbf16, #tpu.memory_space<vmem>>, %arg8: memref<1x128xf32, #tpu.memory_space<vmem>>, %arg9: memref<1x8x128xf32, #tpu.memory_space<vmem>>) attributes {dimension_semantics = [#tpu.dimension_semantics<parallel>, #tpu.dimension_semantics<parallel>], iteration_bounds = array<i64: 2, 1>, scalar_prefetch = 0 : i64, scratch_operands = 0 : i64, tpu.core_type = #tpu.core_type<tc>, window_params = [{transform_indices = @transform_0, window_bounds = array<i64: 1, 8, 4>}, {transform_indices = @transform_1, window_bounds = array<i64: 1, 1, 128>}, {pipeline_mode = #tpu.pipeline_mode<synchronous>, transform_indices = @transform_2, window_bounds = array<i64: 4, 128>}, {pipeline_mode = #tpu.pipeline_mode<synchronous>, transform_indices = @transform_3, window_bounds = array<i64: 128, 128>}, {pipeline_mode = #tpu.pipeline_mode<synchronous>, transform_indices = @transform_4, window_bounds = array<i64: 1, 128>}, {pipeline_mode = #tpu.pipeline_mode<synchronous>, transform_indices = @transform_5, window_bounds = array<i64: 128, 128>}, {pipeline_mode = #tpu.pipeline_mode<synchronous>, transform_indices = @transform_6, window_bounds = array<i64: 1, 128>}, {transform_indices = @transform_7, window_bounds = array<i64: 1, 8, 128>}]} {
    %c0 = arith.constant 0 : index
    %c0_0 = arith.constant 0 : index
    %c0_1 = arith.constant 0 : index
    %0 = vector.load %arg2[%c0, %c0_0, %c0_1] : memref<1x8x4xbf16, #tpu.memory_space<vmem>>, vector<1x8x4xbf16>
    %1 = vector.shape_cast %0 : vector<1x8x4xbf16> to vector<8x4xbf16>
    %c0_2 = arith.constant 0 : index
    %c0_3 = arith.constant 0 : index
    %c0_4 = arith.constant 0 : index
    %2 = vector.load %arg3[%c0_2, %c0_3, %c0_4] : memref<1x1x128xf32, #tpu.memory_space<vmem>>, vector<1x1x128xf32>
    %3 = vector.shape_cast %2 : vector<1x1x128xf32> to vector<1x128xf32>
    %c0_5 = arith.constant 0 : index
    %c0_6 = arith.constant 0 : index
    %4 = vector.load %arg4[%c0_5, %c0_6] : memref<4x128xbf16, #tpu.memory_space<vmem>>, vector<4x128xbf16>
    %cst = arith.constant dense<0.000000e+00> : vector<8x128xf32>
    %5 = tpu.matmul %1, %4, %cst {dimension_numbers = #tpu.dot_dimension_numbers<[1], [0], [0], [1], [0, 0, 1, 1], [], []>} : vector<8x4xbf16>, vector<4x128xbf16>, vector<8x128xf32> -> vector<8x128xf32>
    %6 = vector.broadcast %3 : vector<1x128xf32> to vector<8x128xf32>
    %7 = arith.addf %5, %6 : vector<8x128xf32>
    %cst_7 = arith.constant 0.000000e+00 : f32
    %8 = vector.broadcast %cst_7 : f32 to vector<8x128xf32>
    %9 = arith.maximumf %7, %8 : vector<8x128xf32>
    %10 = arith.truncf %9 : vector<8x128xf32> to vector<8x128xbf16>
    %c0_8 = arith.constant 0 : index
    %c0_9 = arith.constant 0 : index
    %11 = vector.load %arg5[%c0_8, %c0_9] : memref<128x128xbf16, #tpu.memory_space<vmem>>, vector<128x128xbf16>
    %cst_10 = arith.constant dense<0.000000e+00> : vector<8x128xf32>
    %12 = tpu.matmul %10, %11, %cst_10 {dimension_numbers = #tpu.dot_dimension_numbers<[1], [0], [0], [1], [0, 0, 1, 1], [], []>} : vector<8x128xbf16>, vector<128x128xbf16>, vector<8x128xf32> -> vector<8x128xf32>
    %c0_11 = arith.constant 0 : index
    %c0_12 = arith.constant 0 : index
    %13 = vector.load %arg6[%c0_11, %c0_12] : memref<1x128xf32, #tpu.memory_space<vmem>>, vector<1x128xf32>
    %14 = vector.broadcast %13 : vector<1x128xf32> to vector<8x128xf32>
    %15 = arith.addf %12, %14 : vector<8x128xf32>
    %cst_13 = arith.constant 0.000000e+00 : f32
    %16 = vector.broadcast %cst_13 : f32 to vector<8x128xf32>
    %17 = arith.maximumf %15, %16 : vector<8x128xf32>
    %18 = arith.truncf %17 : vector<8x128xf32> to vector<8x128xbf16>
    %c0_14 = arith.constant 0 : index
    %c0_15 = arith.constant 0 : index
    %19 = vector.load %arg7[%c0_14, %c0_15] : memref<128x128xbf16, #tpu.memory_space<vmem>>, vector<128x128xbf16>
    %cst_16 = arith.constant dense<0.000000e+00> : vector<8x128xf32>
    %20 = tpu.matmul %18, %19, %cst_16 {dimension_numbers = #tpu.dot_dimension_numbers<[1], [0], [0], [1], [0, 0, 1, 1], [], []>} : vector<8x128xbf16>, vector<128x128xbf16>, vector<8x128xf32> -> vector<8x128xf32>
    %c0_17 = arith.constant 0 : index
    %c0_18 = arith.constant 0 : index
    %21 = vector.load %arg8[%c0_17, %c0_18] : memref<1x128xf32, #tpu.memory_space<vmem>>, vector<1x128xf32>
    %22 = vector.broadcast %21 : vector<1x128xf32> to vector<8x128xf32>
    %23 = arith.addf %20, %22 : vector<8x128xf32>
    %c0_19 = arith.constant 0 : index
    %c0_20 = arith.constant 0 : index
    %c0_21 = arith.constant 0 : index
    %24 = vector.load %arg9[%c0_19, %c0_20, %c0_21] : memref<1x8x128xf32, #tpu.memory_space<vmem>>, vector<1x8x128xf32>
    %25 = vector.shape_cast %24 : vector<1x8x128xf32> to vector<8x128xf32>
    %26 = vector.shape_cast %23 : vector<8x128xf32> to vector<1x8x128xf32>
    tpu.vector_store %arg9[%c0_19, %c0_20, %c0_21], %26 {strides = array<i32>} : memref<1x8x128xf32, #tpu.memory_space<vmem>>, vector<1x8x128xf32>,
    return
  }
  func.func @transform_0(%arg0: i32, %arg1: i32) -> (i32, i32, i32) {
    %c0_i32 = arith.constant 0 : i32
    %c0_i32_0 = arith.constant 0 : i32
    return %arg0, %arg1, %c0_i32 : i32, i32, i32
  }
  func.func @transform_1(%arg0: i32, %arg1: i32) -> (i32, i32, i32) {
    %c0_i32 = arith.constant 0 : i32
    %c0_i32_0 = arith.constant 0 : i32
    %c0_i32_1 = arith.constant 0 : i32
    return %arg0, %c0_i32, %c0_i32_0 : i32, i32, i32
  }
  func.func @transform_2(%arg0: i32, %arg1: i32) -> (i32, i32) {
    %c0_i32 = arith.constant 0 : i32
    %c0_i32_0 = arith.constant 0 : i32
    %c0_i32_1 = arith.constant 0 : i32
    return %c0_i32, %c0_i32_0 : i32, i32
  }
  func.func @transform_3(%arg0: i32, %arg1: i32) -> (i32, i32) {
    %c0_i32 = arith.constant 0 : i32
    %c0_i32_0 = arith.constant 0 : i32
    %c0_i32_1 = arith.constant 0 : i32
    return %c0_i32, %c0_i32_0 : i32, i32
  }
  func.func @transform_4(%arg0: i32, %arg1: i32) -> (i32, i32) {
    %c0_i32 = arith.constant 0 : i32
    %c0_i32_0 = arith.constant 0 : i32
    %c0_i32_1 = arith.constant 0 : i32
    return %c0_i32, %c0_i32_0 : i32, i32
  }
  func.func @transform_5(%arg0: i32, %arg1: i32) -> (i32, i32) {
    %c0_i32 = arith.constant 0 : i32
    %c0_i32_0 = arith.constant 0 : i32
    %c0_i32_1 = arith.constant 0 : i32
    return %c0_i32, %c0_i32_0 : i32, i32
  }
  func.func @transform_6(%arg0: i32, %arg1: i32) -> (i32, i32) {
    %c0_i32 = arith.constant 0 : i32
    %c0_i32_0 = arith.constant 0 : i32
    %c0_i32_1 = arith.constant 0 : i32
    return %c0_i32, %c0_i32_0 : i32, i32
  }
  func.func @transform_7(%arg0: i32, %arg1: i32) -> (i32, i32, i32) {
    %c0_i32 = arith.constant 0 : i32
    %c0_i32_0 = arith.constant 0 : i32
    return %arg0, %arg1, %c0_i32 : i32, i32, i32
  }
}

</mosaic_0001>

<bundles_post_ra>
// kernel: np_decoder_forward.1
= control target key start
LH: loop header
LB: loop body
LE: loop exit
PB: predicated region body
PF: predicated region fallthrough
CT: control target
= control target key end

     0   :  { %12 = vsyncpa [#allocation3], 0  ;;  %s1022_s0 = inlined_call_operand.vmem [shape: bf16[2,8,4], index: 0, kind: input, shape index: {}]   ;;  %s1023_s1 = inlined_call_operand.vmem [shape: f32[2,1,128], index: 1, kind: input, shape index: {}]   ;;  %s1024_s2 = inlined_call_operand.vmem [shape: bf16[4,128], index: 2, kind: input, shape index: {}]   ;;  %s1025_s3 = inlined_call_operand.hbm [shape: bf16[128,128], index: 3, kind: input, shape index: {}]   ;;  %s1026_s4 = inlined_call_operand.vmem [shape: f32[1,128], index: 4, kind: input, shape index: {}]   ;;  %s1027_s5 = inlined_call_operand.hbm [shape: bf16[128,128], index: 5, kind: input, shape index: {}]   ;;  %s1028_s6 = inlined_call_operand.vmem [shape: f32[1,128], index: 6, kind: input, shape index: {}]   ;;  %s1029_s7 = inlined_call_operand.vmem [shape: f32[2,8,128], index: 7, kind: output, shape index: {}]  }
   0x1   :  { %13 = vsyncpa [#allocation5], 0  ;;  %s934_s24 = smov 0   ;;  %s936_s25 = smov 0  }
   0x2   :  { %s938_s26 = smov 0  }
   0x3 LB: > { %s654_s27 = sadd.s32 4294967295, %s888_s26   ;;  %s31_s28 = sadd.s32 1, %s884_s25  ;;  %s888_s26 = sphi %s938_s26, %s19_s26   ;;  %s884_s25 = sphi %s936_s25, %s1033_s25   ;;  %s880_s24 = sphi %s934_s24, %s1032_s24  }
   0x4   : > { %p33_p0 = scmp.ge.s32.totalorder %s31_s28, 2  ;;  %p656_p1 = scmp.ge.s32.totalorder %s888_s26, 1 }
   0x5   : > { %p223_p2 = scmp.lt.s32.totalorder %s888_s26, 3  ;;  %p959_p4 = scmp.eq.s32.totalorder %s654_s27, 0 }
   0x6   : > { %s1035_s28 = smov (%p33_p0, %s31_s28), 0  ;;  %s237_s10 = sshll.u32 %s1025_s3, 4  ;;  %s238_s10 = int_to_ptr.hbm [resolvable:$true] %s237_s10 }
   0x7   : > { %p955_p3 = pnand %p656_p1, %p223_p2  ;;  %s890_s11 = smov [#allocation2]  }
   0x8   : > { %s239_s12 = sshll.u32 %s890_s11, 4  ;;  %s254_s15 = sshll.u32 %s1027_s5, 4  ;;  %s240_s12 = int_to_ptr.vmem [resolvable:$true] %s239_s12  ;;  %s255_s15 = int_to_ptr.hbm [resolvable:$true] %s254_s15 }
   0x9   : > { %p756_p5 = pneg %p955_p3  ;;  %s891_s16 = smov 64  }
   0xa   : > { %s892_s17 = smov 4   ;;  %s893_s18 = smov [#allocation4]  }
   0xb   : > { %p757_p6 = pnand %p959_p4, %p756_p5  ;;  %s256_s19 = sshll.u32 %s893_s18, 4  ;;  %s257_s19 = int_to_ptr.vmem [resolvable:$true] %s256_s19 }
   0xc   : > { %291 = sbr.rel (%p955_p3) target bundleno = 430 (0x1ae), region = 48 }
   0xd   : > { %759 = dma.hbm_to_vmem [thread:$0]  (!%p757_p6), %s238_s10, 1024, %s240_s12, [#allocation3], %s891_s16, %s891_s16, %s892_s17  }
   0xe   : > { %762 = dma.hbm_to_vmem [thread:$0]  (!%p757_p6), %s255_s15, 1024, %s257_s19, [#allocation5], %s891_s16, %s891_s16, %s892_s17  }
  0x11   : > { %871 = dma.done.wait (%p959_p4), [#allocation3], 1024  }
  0x12   : > { %873 = vsyncadd (%p959_p4), [#allocation3], 4294966272 }
  0x13   : > { %875 = dma.done.wait (%p959_p4), [#allocation5], 1024  }
  0x14   : > { %877 = vsyncadd (%p959_p4), [#allocation5], 4294966272  ;;  %p336_p7 = scmp.lt.s32.totalorder %s880_s24, 1  ;;  %vm364_vm0 = vcmask 1041408   ;;  %v356_v0 = vld [vmem:[%s1024_s2] sm:$0x3] }
  0x15   : > { %v739_v1 = vld [vmem:[#allocation2 + $0x38] sm:$0xff]  ;;  %v366_v2 = vsel %vm364_vm0, %v356_v0, 0  ;;  %vm360_vm1 = vcmask 31744   ;;  %v738_v4 = vld [vmem:[#allocation2 + $0x30] sm:$0xff]  ;;  %v737_v5 = vld [vmem:[#allocation2 + $0x28] sm:$0xff] }
  0x16   : > { %s1037_s24 = smov (!%p336_p7, %s880_s24), 1  ;;  %375 = vmatpush.bf16.msra.mxu0 %v366_v2  ;;  %451 = vmatpush.bf16.msra.mxu1 %v739_v1  ;;  %v736_v6 = vld [vmem:[#allocation2 + $0x20] sm:$0xff]  ;;  %v735_v7 = vld [vmem:[#allocation2 + $0x18] sm:$0xff]  ;;  %v734_v8 = vld [vmem:[#allocation2 + $0x10] sm:$0xff] }
  0x17   : > { %s663_s20 = sshll.u32 %s1037_s24, 2  ;;  %s345_s9 = scalar_lea.vmem %s1023_s1, %s1037_s24  ;;  %v733_v9 = vld [vmem:[#allocation2 + $0x8] sm:$0xff]  ;;  %v732_v10 = vld [vmem:[#allocation2] sm:$0xff]  ;;  %v747_v11 = vld [vmem:[#allocation4 + $0x38] sm:$0xff] }
  0x18   : > { %s342_s23 = scalar_lea.vmem %s1022_s0, %s663_s20  ;;  %534 = vmatpush.bf16.msra.mxu2 %v747_v11  ;;  %v746_v12 = vld [vmem:[#allocation4 + $0x30] sm:$0xff]  ;;  %v745_v13 = vld [vmem:[#allocation4 + $0x28] sm:$0xff]  ;;  %v744_v14 = vld [vmem:[#allocation4 + $0x20] sm:$0xff]  ;;  %s664_s14 = sshll.u32 %s1037_s24, 3 }
  0x19   : > { %v354_v3 = vld [vmem:[%s342_s23] sm:$0xf]  ;;  %v743_v15 = vld [vmem:[#allocation4 + $0x18] sm:$0xff]  ;;  %v742_v16 = vld [vmem:[#allocation4 + $0x10] sm:$0xff]  ;;  %s352_s19 = scalar_lea.vmem %s1029_s7, %s664_s14 }
  0x1a   : > { %665 = vmatmul.msk.bf16.vlgmr.msra.gmra.mxu0 %vm360_vm1, %v354_v3  ;;  %452 = vmatpush.bf16.msra.mxu1 %v738_v4  ;;  %v795_v17 = vld [vmem:[%s345_s9] ss:$0 sm:$0xff]  ;;  %v741_v23 = vld [vmem:[#allocation4 + $0x8] sm:$0xff] }
  0x1b   : > { %v740_v24 = vld [vmem:[#allocation4] sm:$0xff] }
  0x1c   : > { %535 = vmatpush.bf16.msra.mxu2 %v746_v12  ;;  %v796_v25 = vld [vmem:[%s1026_s4] ss:$0 sm:$0xff] }
  0x1d   : > { %v797_v31 = vld [vmem:[%s1028_s6] ss:$0 sm:$0xff] }
  0x1e   : > { %453 = vmatpush.bf16.msra.mxu1 %v737_v5 }
  0x20   : > { %536 = vmatpush.bf16.msra.mxu2 %v745_v13 }
  0x22   : > { %454 = vmatpush.bf16.msra.mxu1 %v736_v6 }
  0x24   : > { %537 = vmatpush.bf16.msra.mxu2 %v744_v14 }
  0x26   : > { %455 = vmatpush.bf16.msra.mxu1 %v735_v7 }
  0x28   : > { %538 = vmatpush.bf16.msra.mxu2 %v743_v15 }
  0x2a   : > { %456 = vmatpush.bf16.msra.mxu1 %v734_v8 }
  0x2c   : > { %539 = vmatpush.bf16.msra.mxu2 %v742_v16 }
  0x2e   : > { %457 = vmatpush.bf16.msra.mxu1 %v733_v9 }
  0x30   : > { %540 = vmatpush.bf16.msra.mxu2 %v741_v23 }
  0x32   : > { %458 = vmatpush.bf16.msra.mxu1 %v732_v10 }
  0x34   : > { %541 = vmatpush.bf16.msra.mxu2 %v740_v24 }
  0x97   : > { %v377_v18 = vpop.f32.mrf.mxu0 }
  0x98   : > { %v378_v19 = vadd.f32 %v795_v17, %v377_v18 }
  0x9a   : > { %v381_v20 = vmax.f32 %v378_v19, 0.0 }
  0x9c   : > { %v382_v21 = vpack.c.bf16 %v381_v20, %v381_v20 }
  0x9e   : > { %459 = vmatmul.bf16.vlgmr.msra.gmra.mxu1 %v382_v21 }
  0x9f   : > { %v379_v22 = vpop.f32.mrf.mxu0 }
 0x11b   : > { %v460_v26 = vpop.f32.mrf.mxu1 }
 0x11c   : > { %v461_v27 = vadd.f32 %v796_v25, %v460_v26 }
 0x11e   : > { %v464_v28 = vmax.f32 %v461_v27, 0.0 }
 0x120   : > { %v465_v29 = vpack.c.bf16 %v464_v28, %v464_v28 }
 0x122   : > { %542 = vmatmul.bf16.vlgmr.msra.gmra.mxu2 %v465_v29 }
 0x123   : > { %v462_v30 = vpop.f32.mrf.mxu1 }
 0x1a5   : > { %v543_v32 = vpop.f32.mrf.mxu2 }
 0x1a6   : > { %v544_v33 = vadd.f32 %v797_v31, %v543_v32 }
 0x1a8   : > { %547 = vst [vmem:[%s352_s19] sm:$0xff] %v544_v33 }
 0x1ad   : > { %v545_v34 = vpop.f32.mrf.mxu2 }
 0x1ae PF: > { %s19_s26 = sadd.s32 1, %s888_s26   ;;  %s1032_s24 = smov %s884_s25 }
 0x1af   : > { %p16_p8 = scmp.ge.s32.totalorder %s19_s26, 4   ;;  %s1033_s25 = smov %s1035_s28 }
 0x1b1   :  { %18 = sbr.rel (!%p16_p8) target bundleno = 3 (0x3), region = 90 }
 0x1b6   :  { %573 = vsyncpa [#allocation3], 1 }
 0x1b7   :  { %575 = vsyncpa [#allocation3 + $0x1], 1 }
 0x1b8   :  { %576 = vsyncpa [#allocation5], 1 }

</bundles_post_ra>
